<compile_context>
chip_gen: v6e
topology: v6e:2x2x1
jax: 0.10.0
libtpu: 0.0.40
codegen_flags: <defaults>
</compile_context>

<pallas_src>
import jax
import jax.numpy as jnp
from jax.experimental import pallas as pl
from jax.experimental.pallas import tpu as pltpu


def _round_up(x, m):
    return ((x + m - 1) // m) * m


def _largest_aligned_divisor(n, align, cap):
    """Largest t <= cap with t % align == 0 and n % t == 0 (None if none)."""
    best = None
    for t in range(align, min(cap, n) + 1, align):
        if n % t == 0:
            best = t
    return best


# ----------------------------- kernels --------------------------------------

def _patch_embed_kernel_single_k(x_ref, w_ref, b_ref, o_ref):
    """Whole reduction in one MXU pass: dot + bias, cast once, single store."""
    acc = jnp.dot(x_ref[...], w_ref[...], preferred_element_type=jnp.float32)
    o_ref[...] = (acc + b_ref[...]).astype(o_ref.dtype)


def _patch_embed_kernel_multi_k(x_ref, w_ref, b_ref, o_ref, acc_ref):
    """K-tiled path: f32 VMEM accumulator, bias folded into k==0, cast at end."""
    k = pl.program_id(2)
    acc = jnp.dot(x_ref[...], w_ref[...], preferred_element_type=jnp.float32)

    @pl.when(k == 0)
    def _():
        acc_ref[...] = acc + b_ref[...]

    @pl.when(k != 0)
    def _():
        acc_ref[...] += acc

    @pl.when(k == pl.num_programs(2) - 1)
    def _():
        o_ref[...] = acc_ref[...].astype(o_ref.dtype)


# --------------------------- pallas wrapper ----------------------------------

def _patch_matmul(patches, w, b, *, out_dtype=jnp.bfloat16):
    """patches: (M, K) bf16, w: (K, N) bf16, b: (N,) f32 -> (M, N) out_dtype."""
    M, K = patches.shape
    K2, N = w.shape
    assert K == K2

    # ---- M tiling: avoid padding the big operand; >=2 tiles for v7x's 2 TCs.
    cap_m = 512
    if M <= cap_m:
        tm = M // 2 if (M >= 16 and M % 16 == 0) else M   # full-extent allowed
        M_pad = M
    else:
        tm = (_largest_aligned_divisor(M, 256, cap_m)
              or _largest_aligned_divisor(M, 8, cap_m))
        if tm is None:
            tm, M_pad = 256, _round_up(M, 256)            # rare fallback: pad
        else:
            M_pad = M

    # ---- K tiling: single reduction step (full-extent block) whenever it fits.
    cap_k = 4096
    if K <= cap_k:
        tk, K_pad = K, K
    else:
        tk = (_largest_aligned_divisor(K, 1024, 2048)
              or _largest_aligned_divisor(K, 128, 2048))
        if tk is None:
            tk, K_pad = 2048, _round_up(K, 2048)
        else:
            K_pad = K

    # ---- N tiling: one lane-dense tile over all of N when reasonable, so the
    # (M, K) patches stream is read from HBM exactly once.
    N_pad = _round_up(N, 128)
    tn = N_pad if N_pad <= 1024 else _largest_aligned_divisor(N_pad, 128, 1024)

    # ---- zero padding (only the tiny weight/bias in the common case).
    if (M_pad, K_pad) != (M, K):
        patches = jnp.pad(patches, ((0, M_pad - M), (0, K_pad - K)))
    if (K_pad, N_pad) != (K, N):
        w = jnp.pad(w, ((0, K_pad - K), (0, N_pad - N)))
    if N_pad != N:
        b = jnp.pad(b, (0, N_pad - N))
    b2d = b.reshape(1, N_pad).astype(jnp.float32)

    grid = (M_pad // tm, N_pad // tn, K_pad // tk)
    n_k = grid[2]

    if n_k == 1:
        kernel = _patch_embed_kernel_single_k
        scratch = []
    else:
        kernel = _patch_embed_kernel_multi_k
        scratch = [pltpu.VMEM((tm, tn), jnp.float32)]

    in_bytes = patches.dtype.itemsize
    out_bytes = jnp.dtype(out_dtype).itemsize
    cost = pl.CostEstimate(
        flops=2 * M_pad * N_pad * K_pad,
        bytes_accessed=(grid[1] * M_pad * K_pad * in_bytes     # patches per N tile
                        + grid[0] * K_pad * N_pad * in_bytes   # weights per M tile
                        + M_pad * N_pad * out_bytes),          # output writeback
        transcendentals=0,
    )

    out = pl.pallas_call(
        kernel,
        out_shape=jax.ShapeDtypeStruct((M_pad, N_pad), out_dtype),
        grid_spec=pltpu.PrefetchScalarGridSpec(
            num_scalar_prefetch=0,
            grid=grid,
            in_specs=[
                pl.BlockSpec((tm, tk), lambda i, j, k: (i, k)),
                pl.BlockSpec((tk, tn), lambda i, j, k: (k, j)),
                pl.BlockSpec((1, tn), lambda i, j, k: (0, j)),
            ],
            out_specs=pl.BlockSpec((tm, tn), lambda i, j, k: (i, j)),
            scratch_shapes=scratch,
        ),
        compiler_params=pltpu.CompilerParams(
            # M/N parallel (megacore / v7x 2-TC sharding), K reduction last.
            dimension_semantics=("parallel", "parallel", "arbitrary"),
            vmem_limit_bytes=48 * 1024 * 1024,
        ),
        cost_estimate=cost,
    )(patches, w, b2d)

    if (M_pad, N_pad) != (M, N):
        out = out[:M, :N]
    return out


def patch_embedding_forward(x, conv_w, conv_b, patch_size, *,
                            compute_dtype=jnp.bfloat16, out_dtype=None):
    """Equivalent to PatchEmbedding.forward.

    x      : (B, C, H, W)  NCHW, like PyTorch
    conv_w : (O, C, P, P)  conv weight
    conv_b : (O,)          conv bias
    returns: (B, nH*nW, O) in out_dtype (default: compute_dtype)
    """
    B, C, H, W = x.shape
    O = conv_w.shape[0]
    P = patch_size
    nH, nW = H // P, W // P
    if out_dtype is None:
        out_dtype = compute_dtype

    # Single bf16 transpose pass for patch extraction (cast BEFORE the
    # transpose so the one materialized pass moves half the bytes):
    #   (B, C, nH, P, nW, P) -> (B, nH, nW, P, P, C) -> (M, K) with K=(pi,pj,c)
    patches = x.astype(compute_dtype).reshape(B, C, nH, P, nW, P)
    patches = patches.transpose(0, 2, 4, 3, 5, 1)
    patches = patches.reshape(B * nH * nW, P * P * C)

    # Matching one-time permutation of the tiny conv weight: (O,C,P,P)->(pi,pj,c,O).
    wmat = jnp.transpose(conv_w, (2, 3, 1, 0)).reshape(P * P * C, O)
    wmat = wmat.astype(compute_dtype)

    out = _patch_matmul(patches, wmat, conv_b.astype(jnp.float32),
                        out_dtype=out_dtype)                     # (M, O)
    return out.reshape(B, nH * nW, O)


if __name__ == "__main__":
    # Small shapes consistent with the module: num_hiddens is both the conv
    # in_channels and out_channels.
    B = 2
    num_hiddens = 128
    patch_size = 4
    img_size = 16
    nH = nW = img_size // patch_size          # 4 -> num_patches = 16

    key = jax.random.PRNGKey(0)
    kx, kw, kb = jax.random.split(key, 3)

    x = jax.random.normal(kx, (B, num_hiddens, img_size, img_size), jnp.float32)
    fan_in = num_hiddens * patch_size * patch_size
    bound = 1.0 / (fan_in ** 0.5)
    conv_w = jax.random.uniform(
        kw, (num_hiddens, num_hiddens, patch_size, patch_size),
        jnp.float32, -bound, bound)
    conv_b = jax.random.uniform(kb, (num_hiddens,), jnp.float32, -bound, bound)

    out = patch_embedding_forward(x, conv_w, conv_b, patch_size)
    out = jax.block_until_ready(out)
    assert out.shape == (B, nH * nW, num_hiddens), out.shape

    # Reference: plain JAX conv (== nn.Conv2d with stride == kernel_size),
    # then flatten(2).transpose(1,2).
    ref_conv = jax.lax.conv_general_dilated(
        x, conv_w,
        window_strides=(patch_size, patch_size),
        padding="VALID",
        dimension_numbers=("NCHW", "OIHW", "NCHW"),
    ) + conv_b[None, :, None, None]
    ref = ref_conv.reshape(B, num_hiddens, nH * nW).transpose(0, 2, 1)

    # bf16 operands + bf16 output with f32 accumulation -> loose tolerance.
    out_f32 = out.astype(jnp.float32)
    max_err = float(jnp.max(jnp.abs(out_f32 - ref)))
    assert jnp.allclose(out_f32, ref, atol=3e-2, rtol=3e-2), max_err
    print("KERNEL_OK")
</pallas_src>

<mosaic_0001>
module attributes {stable_mosaic.version = 11 : i64} {
  func.func @_patch_embed_kernel_single_k(%arg0: i32, %arg1: i32, %arg2: i32, %arg3: memref<16x2048xbf16, #tpu.memory_space<vmem>>, %arg4: memref<2048x128xbf16, #tpu.memory_space<vmem>>, %arg5: memref<1x128xf32, #tpu.memory_space<vmem>>, %arg6: memref<16x128xbf16, #tpu.memory_space<vmem>>) attributes {dimension_semantics = [#tpu.dimension_semantics<parallel>, #tpu.dimension_semantics<parallel>, #tpu.dimension_semantics<arbitrary>], iteration_bounds = array<i64: 2, 1, 1>, scalar_prefetch = 0 : i64, scratch_operands = 0 : i64, tpu.core_type = #tpu.core_type<tc>, window_params = [{transform_indices = @transform_0, window_bounds = array<i64: 16, 2048>}, {transform_indices = @transform_1, window_bounds = array<i64: 2048, 128>}, {transform_indices = @transform_2, window_bounds = array<i64: 1, 128>}, {transform_indices = @transform_3, window_bounds = array<i64: 16, 128>}]} {
    %c0 = arith.constant 0 : index
    %c0_0 = arith.constant 0 : index
    %0 = vector.load %arg3[%c0, %c0_0] : memref<16x2048xbf16, #tpu.memory_space<vmem>>, vector<16x2048xbf16>
    %c0_1 = arith.constant 0 : index
    %c0_2 = arith.constant 0 : index
    %1 = vector.load %arg4[%c0_1, %c0_2] : memref<2048x128xbf16, #tpu.memory_space<vmem>>, vector<2048x128xbf16>
    %cst = arith.constant dense<0.000000e+00> : vector<16x128xf32>
    %2 = tpu.matmul %0, %1, %cst {dimension_numbers = #tpu.dot_dimension_numbers<[1], [0], [0], [1], [0, 0, 1, 1], [], []>} : vector<16x2048xbf16>, vector<2048x128xbf16>, vector<16x128xf32> -> vector<16x128xf32>
    %c0_3 = arith.constant 0 : index
    %c0_4 = arith.constant 0 : index
    %3 = vector.load %arg5[%c0_3, %c0_4] : memref<1x128xf32, #tpu.memory_space<vmem>>, vector<1x128xf32>
    %4 = vector.broadcast %3 : vector<1x128xf32> to vector<16x128xf32>
    %5 = arith.addf %2, %4 : vector<16x128xf32>
    %6 = arith.truncf %5 : vector<16x128xf32> to vector<16x128xbf16>
    %c0_5 = arith.constant 0 : index
    %c0_6 = arith.constant 0 : index
    %7 = vector.load %arg6[%c0_5, %c0_6] : memref<16x128xbf16, #tpu.memory_space<vmem>>, vector<16x128xbf16>
    tpu.vector_store %arg6[%c0_5, %c0_6], %6 {strides = array<i32>} : memref<16x128xbf16, #tpu.memory_space<vmem>>, vector<16x128xbf16>,
    return
  }
  func.func @transform_0(%arg0: i32, %arg1: i32, %arg2: i32) -> (i32, i32) {
    %c0_i32 = arith.constant 0 : i32
    return %arg0, %arg2 : i32, i32
  }
  func.func @transform_1(%arg0: i32, %arg1: i32, %arg2: i32) -> (i32, i32) {
    %c0_i32 = arith.constant 0 : i32
    return %arg2, %arg1 : i32, i32
  }
  func.func @transform_2(%arg0: i32, %arg1: i32, %arg2: i32) -> (i32, i32) {
    %c0_i32 = arith.constant 0 : i32
    %c0_i32_0 = arith.constant 0 : i32
    return %c0_i32, %arg1 : i32, i32
  }
  func.func @transform_3(%arg0: i32, %arg1: i32, %arg2: i32) -> (i32, i32) {
    %c0_i32 = arith.constant 0 : i32
    return %arg0, %arg1 : i32, i32
  }
}

</mosaic_0001>

<bundles_post_ra>
// kernel: tpu_custom_call.1
= control target key start
LH: loop header
LB: loop body
LE: loop exit
PB: predicated region body
PF: predicated region fallthrough
CT: control target
= control target key end

     0   :  { %8 = vsyncpa [#allocation3], 0  ;;  %s2787_s0 = inlined_call_operand.hbm [shape: bf16[32,2048], index: 0, kind: input, shape index: {}]   ;;  %s2788_s1 = inlined_call_operand.hbm [shape: bf16[2048,128], index: 1, kind: input, shape index: {}]   ;;  %s2789_s2 = inlined_call_operand.vmem [shape: f32[1,128], index: 2, kind: input, shape index: {}]   ;;  %s2790_s3 = inlined_call_operand.hbm [shape: bf16[32,128], index: 3, kind: output, shape index: {}]  }
   0x1   :  { %10 = vsyncpa [#allocation3 + $0x1], 0 }
   0x2   :  { %11 = vsyncpa [#allocation6], 0 }
   0x3   :  { %12 = vsyncpa [#allocation4], 0 }
   0x4   :  { %14 = vsyncpa [#allocation4 + $0x1], 0  ;;  %s2581_s12 = smov 0   ;;  %s2583_s13 = smov 0  }
   0x5   :  { %s2585_s14 = smov 0   ;;  %s2587_s15 = smov 0  }
   0x6   :  { %s2589_s16 = smov 0   ;;  %s2591_s17 = smov 0  }
   0x7 LB: > { %s1855_s18 = sadd.s32 4294967295, %s2551_s17   ;;  %s1856_s19 = sadd.s32 4294967294, %s2551_s17   ;;  %s2551_s17 = sphi %s2591_s17, %s20_s17   ;;  %s2547_s16 = sphi %s2589_s16, %s2810_s16   ;;  %s2543_s15 = sphi %s2587_s15, %s2809_s15   ;;  %s2539_s14 = sphi %s2585_s14, %s2808_s14   ;;  %s2535_s13 = sphi %s2583_s13, %s2807_s13   ;;  %s2531_s12 = sphi %s2581_s12, %s2806_s12  }
   0x8   : > { %p61_p0 = scmp.ne.s32.totalorder %s2535_s13, %s2531_s12  ;;  %p2615_p1 = scmp.eq.s32.totalorder %s1855_s18, 0 }
   0x9   : > { %p2619_p2 = scmp.eq.s32.totalorder %s1855_s18, 1  ;;  %p147_p3 = scmp.eq.s32.totalorder %s1856_s19, 1 }
   0xa   : > { %p2625_p4 = por %p2615_p1, %p61_p0  ;;  %p1857_p5 = scmp.ge.s32.totalorder %s2551_s17, 1 }
   0xb   : > { %p2630_p6 = por %p147_p3, %p61_p0  ;;  %p154_p7 = scmp.lt.s32.totalorder %s2551_s17, 3 }
   0xc   : > { %s2795_s22 = scalar_select %p2625_p4, 1, 0 }
   0xd   : > { %s2796_s23 = scalar_select %p2630_p6, 1, 0 }
   0xe   : > { %p2635_p8 = pnand %p1857_p5, %p154_p7  ;;  %s2553_s25 = smov [#allocation5]  }
   0xf   : > { %s170_s26 = sshll.u32 %s2553_s25, 4  ;;  %s39_s28 = sadd.s32 1, %s2547_s16  ;;  %s171_s26 = int_to_ptr.vmem [resolvable:$true] %s170_s26 }
  0x10   : > { %p2215_p9 = pneg %p2635_p8  ;;  %s2424_s29 = scalar_lea.vmem %s171_s26, 16384 }
  0x11   : > { %p2425_p13 = scmp.ne.s32.totalorder %s171_s26, %s2424_s29  ;;  %p2432_p5 = scmp.lt.s32.totalorder %s171_s26, %s171_s26 }
  0x12   : > { %p2644_p11 = pnand %p2215_p9, %p2615_p1  ;;  %p2433_p7 = scmp.lt.s32.totalorder %s2424_s29, %s2424_s29 }
  0x14   : > { %p2415_p12 = pneg %p2644_p11  ;;  %p2434_p6 = por %p2433_p7, %p2432_p5 }
  0x16   : > { %p2427_p0 = pnand %p2425_p13, %p2415_p12 }
  0x18   : > { %p2428_p3 = pneg %p2427_p0 }
  0x1a   : > { %p2435_p4 = pnand %p2434_p6, %p2428_p3 }
  0x1c   : > { %2438 = shalt.err (!%p2435_p4)
}
  0x1d   : > { %s2792_s30 = smov 64   ;;  %s2555_s4 = smov 4  }
  0x1e   : > { %2218 = dma.hbm_to_vmem [thread:$0]  (!%p2644_p11), %s2788_s1, 16384, %s171_s26, [#allocation6], %s2792_s30, %s2792_s30, %s2555_s4  }
  0x1f   : > { %p41_p4 = scmp.ge.s32.totalorder %s39_s28, 2  ;;  %s48_s7 = sadd.s32 1, %s2539_s14 }
  0x20   : > { %p55_p6 = scmp.ne.s32.totalorder %s2539_s14, %s2535_s13  ;;  %p56_p9 = scmp.eq.s32.totalorder %s2551_s17, 0 }
  0x21   : > { %s2812_s28 = smov (%p41_p4, %s39_s28), 0  ;;  %p2228_p0 = scmp.lt.s32.totalorder %s2551_s17, 2 }
  0x22   : > { %p2664_p12 = por %p56_p9, %p55_p6  ;;  %p2670_p13 = por %p2619_p2, %p55_p6 }
  0x23   : > { %s43_s10 = ssub.s32 %s2547_s16, %s2812_s28  ;;  %s190_s11 = sand.u32 1, %s2539_s14  }
  0x24   : > { %p46_p11 = scmp.eq.s32.totalorder %s43_s10, 0  ;;  %s1861_s18 = sshll.u32 %s190_s11, 7 }
  0x25   : > { %s2022_s25 = sshll.u32 %s2547_s16, 11  ;;  %s194_s4 = scalar_lea.vmem [#allocation2], %s1861_s18 }
  0x26   : > { %s2679_s19 = scalar_select %p46_p11, %s2539_s14, %s48_s7  }
  0x27   : > { %s203_s29 = scalar_lea.hbm %s2787_s0, %s2022_s25  ;;  %s204_s5 = sshll.u32 %s194_s4, 4  ;;  %s205_s5 = int_to_ptr.vmem [resolvable:$true] %s204_s5 }
  0x28   : > { %p2687_p2 = pnand %p2228_p0, %p2664_p12  ;;  %s191_s6 = scalar_lea.sflag [#allocation3], %s190_s11 }
  0x29   : > { %s2452_s10 = scalar_lea.vmem %s205_s5, 2048  ;;  %s2556_s7 = smov [#allocation2]  }
  0x2a   : > { %p2441_p3 = pneg %p2687_p2  ;;  %p2453_p5 = scmp.ne.s32.totalorder %s205_s5, %s2452_s10 }
  0x2b   : > { %s2457_s30 = sshll.u32 %s2556_s7, 4  ;;  %s2458_s30 = int_to_ptr.vmem [resolvable:$false] %s2457_s30 }
  0x2c   : > { %p2455_p7 = pnand %p2453_p5, %p2441_p3  ;;  %s2459_s25 = scalar_lea.vmem %s2458_s30, 4096 }
  0x2d   : > { %p2460_p6 = scmp.lt.s32.totalorder %s205_s5, %s2458_s30  ;;  %p2461_p9 = scmp.lt.s32.totalorder %s2459_s25, %s2452_s10 }
  0x2e   : > { %p2456_p4 = pneg %p2455_p7 }
  0x2f   : > { %p2462_p11 = por %p2461_p9, %p2460_p6 }
  0x31   : > { %p2463_p10 = pnand %p2462_p11, %p2456_p4 }
  0x33   : > { %2466 = shalt.err (!%p2463_p10)
}
  0x34   : > { %s2557_s8 = smov 1024   ;;  %s2802_s18 = smov 64  }
  0x35   : > { %2222 = dma.hbm_to_vmem [thread:$0]  (!%p2687_p2), %s203_s29, 2048, %s205_s5, %s191_s6, %s2557_s8, %s2557_s8, %s2802_s18  }
  0x36   : > { %216 = sbr.rel (%p2635_p8) target bundleno = 413 (0x19d), region = 32  ;;  %s2699_s11 = sand.u32 (!%p2635_p8), 1, %s2535_s13  }
  0x37   : > { %s1866_s26 = sshll.u32 (!%p2635_p8), %s2699_s11, 7  ;;  %s219_s30 = scalar_lea.sflag (!%p2635_p8), [#allocation3], %s2699_s11 }
  0x38   : > { %s2703_s27 = scalar_lea.vmem (!%p2635_p8), [#allocation2], %s1866_s26  ;;  %p2803_p12 = scmp.ne.s32.totalorder (!%p2635_p8), %s2795_s22, 0 }
  0x3b   : > { %2518 = dma.done.wait (%p2803_p12), %s219_s30, 2048  }
  0x3c   : > { %2520 = vsyncadd (%p2803_p12), %s219_s30, 4294965248 }
  0x3d   : > { %2522 = dma.done.wait (%p2615_p1), [#allocation6], 16384  }
  0x3e   : > { %2524 = vsyncadd (%p2615_p1), [#allocation6], 4294950912  ;;  %v2285_v0 = vld [vmem:[#allocation5 + $0x78] sm:$0xff]   ;;  %v2289_v4 = vld [vmem:[#allocation5 + $0x70] sm:$0xff]   ;;  %s1868_s24 = sshll.u32 %s2699_s11, 3  ;;  %s2025_s29 = sshll.u32 %s2543_s15, 7 }
  0x3f   : > { %v2286_v1 = vld [vmem:[#allocation5 + $0xf8] sm:$0xff]   ;;  %2031 = vmatprep.subr.bf16.mxu0 %v2285_v0  ;;  %v2290_v5 = vld [vmem:[#allocation5 + $0xf0] sm:$0xff]   ;;  %v2293_v8 = vld [vmem:[#allocation5 + $0x68] sm:$0xff]   ;;  %s251_s4 = scalar_lea.vmem [#allocation7], %s1868_s24  ;;  %s2737_s10 = scalar_lea.hbm %s2790_s3, %s2025_s29 }
  0x40   : > { %v2287_v2 = vld [vmem:[#allocation5 + $0x38] sm:$0xff]   ;;  %2053 = vmatprep.subr.bf16.mxu1 %v2286_v1  ;;  %v2291_v6 = vld [vmem:[#allocation5 + $0x30] sm:$0xff]   ;;  %v2294_v9 = vld [vmem:[#allocation5 + $0xe8] sm:$0xff]   ;;  %s1740_s5 = sshll.u32 %s251_s4, 4  ;;  %s1726_s7 = scalar_lea.sflag [#allocation4], %s2699_s11  ;;  %s2739_s5 = int_to_ptr.vmem [resolvable:$true] %s1740_s5 }
  0x41   : > { %v2288_v3 = vld [vmem:[#allocation5 + $0xb8] sm:$0xff]   ;;  %2032 = vmatpush3.bf16.msra.mxu0 %v2287_v2  ;;  %v2292_v7 = vld [vmem:[#allocation5 + $0xb0] sm:$0xff]   ;;  %v2295_v10 = vld [vmem:[#allocation5 + $0x28] sm:$0xff]   ;;  %s2467_s25 = scalar_lea.vmem %s2739_s5, 128  ;;  %s2558_s15 = smov [#allocation7]  }
  0x42   : > { %2054 = vmatpush3.bf16.msra.mxu1 %v2288_v3  ;;  %2033 = vmatprep.subr.bf16.mxu0 %v2289_v4  ;;  %v2296_v11 = vld [vmem:[#allocation5 + $0xa8] sm:$0xff]   ;;  %v2297_v12 = vld [vmem:[#allocation5 + $0x60] sm:$0xff]   ;;  %v2301_v16 = vld [vmem:[#allocation5 + $0x58] sm:$0xff]   ;;  %p2468_p1 = scmp.ne.s32.totalorder %s2739_s5, %s2467_s25  ;;  %s2471_s8 = sshll.u32 %s2558_s15, 4  ;;  %s2472_s8 = int_to_ptr.vmem [resolvable:$false] %s2471_s8 }
  0x43   : > { %2055 = vmatprep.subr.bf16.mxu1 %v2290_v5  ;;  %v2298_v13 = vld [vmem:[#allocation5 + $0xe0] sm:$0xff]   ;;  %v2302_v17 = vld [vmem:[#allocation5 + $0xd8] sm:$0xff]   ;;  %v2305_v20 = vld [vmem:[#allocation5 + $0x50] sm:$0xff]   ;;  %s2473_s18 = scalar_lea.vmem %s2472_s8, 256  ;;  %p2474_p0 = scmp.lt.s32.totalorder %s2739_s5, %s2472_s8 }
  0x44   : > { %v2299_v14 = vld [vmem:[#allocation5 + $0x20] sm:$0xff]   ;;  %v2303_v18 = vld [vmem:[#allocation5 + $0x18] sm:$0xff]   ;;  %v2306_v21 = vld [vmem:[#allocation5 + $0xd0] sm:$0xff]   ;;  %p2469_p8 = pnand %p2468_p1, %p2670_p13  ;;  %p2475_p2 = scmp.lt.s32.totalorder %s2473_s18, %s2467_s25 }
  0x45   : > { %2034 = vmatpush3.bf16.msra.mxu0 %v2291_v6  ;;  %v2300_v15 = vld [vmem:[#allocation5 + $0xa0] sm:$0xff]   ;;  %v2304_v19 = vld [vmem:[#allocation5 + $0x98] sm:$0xff]   ;;  %v2307_v22 = vld [vmem:[#allocation5 + $0x10] sm:$0xff]  }
  0x46   : > { %2056 = vmatpush3.bf16.msra.mxu1 %v2292_v7  ;;  %2035 = vmatprep.subr.bf16.mxu0 %v2293_v8  ;;  %v2308_v23 = vld [vmem:[#allocation5 + $0x90] sm:$0xff]   ;;  %v2309_v24 = vld [vmem:[#allocation5 + $0x48] sm:$0xff]   ;;  %v2313_v28 = vld [vmem:[#allocation5 + $0x40] sm:$0xff]   ;;  %p2470_p10 = pneg %p2469_p8  ;;  %p2476_p3 = por %p2475_p2, %p2474_p0 }
  0x47   : > { %2057 = vmatprep.subr.bf16.mxu1 %v2294_v9  ;;  %v2310_v25 = vld [vmem:[#allocation5 + $0xc8] sm:$0xff]   ;;  %v2314_v29 = vld [vmem:[#allocation5 + $0xc0] sm:$0xff]   ;;  %v2317_v40 = vld [vmem:[#allocation5 + $0x178] sm:$0xff]  }
  0x48   : > { %v2311_v26 = vld [vmem:[#allocation5 + $0x8] sm:$0xff]   ;;  %v2315_v30 = vld [vmem:[#allocation5] sm:$0xff]   ;;  %v2318_v41 = vld [vmem:[#allocation5 + $0x1f8] sm:$0xff]   ;;  %p2477_p5 = pnand %p2476_p3, %p2470_p10 }
  0x49   : > { %2036 = vmatpush3.bf16.msra.mxu0 %v2295_v10  ;;  %v2312_v27 = vld [vmem:[#allocation5 + $0x88] sm:$0xff]   ;;  %v2316_v31 = vld [vmem:[#allocation5 + $0x80] sm:$0xff]   ;;  %v2319_v42 = vld [vmem:[#allocation5 + $0x138] sm:$0xff]  }
  0x4a   : > { %2058 = vmatpush3.bf16.msra.mxu1 %v2296_v11  ;;  %2037 = vmatprep.subr.bf16.mxu0 %v2297_v12  ;;  %v260_v32 = vld [vmem:[%s2703_s27] sm:$0xff]  ;;  %v261_v34 = vld [vmem:[%s2703_s27 + $0x8] sm:$0xff]  ;;  %v2320_v43 = vld [vmem:[#allocation5 + $0x1b8] sm:$0xff]  }
  0x4b   : > { %2059 = vmatprep.subr.bf16.mxu1 %v2298_v13  ;;  %v268_v33 = vld [vmem:[%s2703_s27 + $0x40] sm:$0xff]  ;;  %v269_v37 = vld [vmem:[%s2703_s27 + $0x48] sm:$0xff]  ;;  %v2321_v44 = vld [vmem:[#allocation5 + $0x170] sm:$0xff]  }
  0x4c   : > { %v1870_v35 = vcombine.low %v260_v32, %v268_v33  ;;  %v1871_v36 = vcombine.high %v260_v32, %v268_v33  ;;  %v1872_v38 = vcombine.low %v261_v34, %v269_v37  ;;  %v1873_v39 = vcombine.high %v261_v34, %v269_v37  ;;  %v2322_v45 = vld [vmem:[#allocation5 + $0x1f0] sm:$0xff]   ;;  %v2325_v48 = vld [vmem:[#allocation5 + $0x168] sm:$0xff]   ;;  %v2329_v52 = vld [vmem:[#allocation5 + $0x160] sm:$0xff]  }
  0x4d   : > { %2038 = vmatpush3.bf16.msra.mxu0 %v2299_v14  ;;  %v2323_v46 = vld [vmem:[#allocation5 + $0x130] sm:$0xff]   ;;  %v2326_v49 = vld [vmem:[#allocation5 + $0x1e8] sm:$0xff]   ;;  %v2330_v53 = vld [vmem:[#allocation5 + $0x1e0] sm:$0xff]  }
  0x4e   : > { %2060 = vmatpush3.bf16.msra.mxu1 %v2300_v15  ;;  %2039 = vmatprep.subr.bf16.mxu0 %v2301_v16  ;;  %v2324_v47 = vld [vmem:[#allocation5 + $0x1b0] sm:$0xff]   ;;  %v2327_v50 = vld [vmem:[#allocation5 + $0x128] sm:$0xff]   ;;  %v2331_v54 = vld [vmem:[#allocation5 + $0x120] sm:$0xff]  }
  0x4f   : > { %2061 = vmatprep.subr.bf16.mxu1 %v2302_v17  ;;  %1419 = vmatprep.mubr.bf16.mxu0 %v1871_v36  ;;  %v2328_v51 = vld [vmem:[#allocation5 + $0x1a8] sm:$0xff]   ;;  %v2332_v55 = vld [vmem:[#allocation5 + $0x1a0] sm:$0xff]   ;;  %v2333_v56 = vld [vmem:[#allocation5 + $0x158] sm:$0xff]  }
  0x50   : > { %1460 = vmatprep.mubr.bf16.mxu1 %v1873_v39  ;;  %v2334_v57 = vld [vmem:[#allocation5 + $0x1d8] sm:$0xff]   ;;  %v2337_v60 = vld [vmem:[#allocation5 + $0x150] sm:$0xff]   ;;  %v2341_v0 = vld [vmem:[#allocation5 + $0x148] sm:$0xff]  }
  0x51   : > { %2040 = vmatpush3.bf16.msra.mxu0 %v2303_v18  ;;  %v2335_v58 = vld [vmem:[#allocation5 + $0x118] sm:$0xff]   ;;  %v2338_v61 = vld [vmem:[#allocation5 + $0x1d0] sm:$0xff]   ;;  %v2342_v1 = vld [vmem:[#allocation5 + $0x1c8] sm:$0xff]  }
  0x52   : > { %2062 = vmatpush3.bf16.msra.mxu1 %v2304_v19  ;;  %2041 = vmatprep.subr.bf16.mxu0 %v2305_v20  ;;  %v2336_v59 = vld [vmem:[#allocation5 + $0x198] sm:$0xff]   ;;  %v2339_v62 = vld [vmem:[#allocation5 + $0x110] sm:$0xff]   ;;  %v2343_v2 = vld [vmem:[#allocation5 + $0x108] sm:$0xff]  }
  0x53   : > { %2063 = vmatprep.subr.bf16.mxu1 %v2306_v21  ;;  %v2340_v63 = vld [vmem:[#allocation5 + $0x190] sm:$0xff]   ;;  %v2344_v3 = vld [vmem:[#allocation5 + $0x188] sm:$0xff]   ;;  %v2345_v4 = vld [vmem:[#allocation5 + $0x140] sm:$0xff]  }
  0x54   : > { %v2346_v5 = vld [vmem:[#allocation5 + $0x1c0] sm:$0xff]   ;;  %v262_v8 = vld [vmem:[%s2703_s27 + $0x10] sm:$0xff]  ;;  %v263_v12 = vld [vmem:[%s2703_s27 + $0x18] sm:$0xff] }
  0x55   : > { %2042 = vmatpush3.bf16.msra.mxu0 %v2307_v22  ;;  %v2347_v6 = vld [vmem:[#allocation5 + $0x100] sm:$0xff]   ;;  %v270_v9 = vld [vmem:[%s2703_s27 + $0x50] sm:$0xff]  ;;  %v271_v13 = vld [vmem:[%s2703_s27 + $0x58] sm:$0xff] }
  0x56   : > { %2064 = vmatpush3.bf16.msra.mxu1 %v2308_v23  ;;  %2043 = vmatprep.subr.bf16.mxu0 %v2309_v24  ;;  %v2348_v7 = vld [vmem:[#allocation5 + $0x180] sm:$0xff]   ;;  %v1874_v10 = vcombine.low %v262_v8, %v270_v9  ;;  %v1875_v11 = vcombine.high %v262_v8, %v270_v9  ;;  %v1876_v14 = vcombine.low %v263_v12, %v271_v13  ;;  %v2349_v16 = vld [vmem:[#allocation5 + $0x278] sm:$0xff]   ;;  %v2353_v20 = vld [vmem:[#allocation5 + $0x270] sm:$0xff]  }
  0x57   : > { %2065 = vmatprep.subr.bf16.mxu1 %v2310_v25  ;;  %v1877_v15 = vcombine.high %v263_v12, %v271_v13  ;;  %v2350_v17 = vld [vmem:[#allocation5 + $0x2f8] sm:$0xff]   ;;  %v2354_v21 = vld [vmem:[#allocation5 + $0x2f0] sm:$0xff]   ;;  %v2357_v24 = vld [vmem:[#allocation5 + $0x268] sm:$0xff]  }
  0x58   : > { %v2351_v18 = vld [vmem:[#allocation5 + $0x238] sm:$0xff]   ;;  %v2355_v22 = vld [vmem:[#allocation5 + $0x230] sm:$0xff]   ;;  %v2358_v25 = vld [vmem:[#allocation5 + $0x2e8] sm:$0xff]  }
  0x59   : > { %2044 = vmatpush3.bf16.msra.mxu0 %v2311_v26  ;;  %v2352_v19 = vld [vmem:[#allocation5 + $0x2b8] sm:$0xff]   ;;  %v2356_v23 = vld [vmem:[#allocation5 + $0x2b0] sm:$0xff]   ;;  %v2359_v26 = vld [vmem:[#allocation5 + $0x228] sm:$0xff]  }
  0x5a   : > { %2066 = vmatpush3.bf16.msra.mxu1 %v2312_v27  ;;  %2045 = vmatprep.subr.bf16.mxu0 %v2313_v28  ;;  %v2360_v27 = vld [vmem:[#allocation5 + $0x2a8] sm:$0xff]   ;;  %v2361_v28 = vld [vmem:[#allocation5 + $0x260] sm:$0xff]   ;;  %v2365_v32 = vld [vmem:[#allocation5 + $0x258] sm:$0xff]  }
  0x5b   : > { %2067 = vmatprep.subr.bf16.mxu1 %v2314_v29  ;;  %v2362_v29 = vld [vmem:[#allocation5 + $0x2e0] sm:$0xff]   ;;  %v2366_v33 = vld [vmem:[#allocation5 + $0x2d8] sm:$0xff]   ;;  %v2369_v36 = vld [vmem:[#allocation5 + $0x250] sm:$0xff]  }
  0x5c   : > { %v2367_v34 = vld [vmem:[#allocation5 + $0x218] sm:$0xff]   ;;  %v2370_v37 = vld [vmem:[#allocation5 + $0x2d0] sm:$0xff]  }
  0x5d   : > { %2046 = vmatpush3.bf16.msra.mxu0 %v2315_v30  ;;  %v2363_v30 = vld [vmem:[#allocation5 + $0x220] sm:$0xff]   ;;  %v2372_v39 = vld [vmem:[#allocation5 + $0x290] sm:$0xff]   ;;  %v2397_v8 = vld [vmem:[#allocation5 + $0x358] sm:$0xff]  }
  0x5e   : > { %2068 = vmatpush3.bf16.msra.mxu1 %v2316_v31  ;;  %2075 = vmatprep.subr.bf16.mxu0 %v2317_v40  ;;  %v2364_v31 = vld [vmem:[#allocation5 + $0x2a0] sm:$0xff]   ;;  %v2373_v40 = vld [vmem:[#allocation5 + $0x248] sm:$0xff]   ;;  %v2398_v9 = vld [vmem:[#allocation5 + $0x3d8] sm:$0xff]  }
  0x5f   : > { %2097 = vmatprep.subr.bf16.mxu1 %v2318_v41  ;;  %v2374_v41 = vld [vmem:[#allocation5 + $0x2c8] sm:$0xff]   ;;  %v2401_v12 = vld [vmem:[#allocation5 + $0x350] sm:$0xff]  }
  0x60   : > { %1420 = vmatmul.mubr.bf16.vlgmr.msra.gmra.mxu0 %v1870_v35  ;;  %v2368_v35 = vld [vmem:[#allocation5 + $0x298] sm:$0xff]   ;;  %v2402_v13 = vld [vmem:[#allocation5 + $0x3d0] sm:$0xff]  }
  0x61   : > { %1461 = vmatmul.mubr.bf16.vlgmr.msra.gmra.mxu1 %v1872_v38  ;;  %2076 = vmatpush3.bf16.msra.mxu0 %v2319_v42  ;;  %v2371_v38 = vld [vmem:[#allocation5 + $0x210] sm:$0xff]   ;;  %v2375_v42 = vld [vmem:[#allocation5 + $0x208] sm:$0xff]  }
  0x62   : > { %2098 = vmatpush3.bf16.msra.mxu1 %v2320_v43  ;;  %2077 = vmatprep.subr.bf16.mxu0 %v2321_v44  ;;  %v2376_v43 = vld [vmem:[#allocation5 + $0x288] sm:$0xff]   ;;  %v2377_v44 = vld [vmem:[#allocation5 + $0x240] sm:$0xff]  }
  0x63   : > { %2099 = vmatprep.subr.bf16.mxu1 %v2322_v45  ;;  %1501 = vmatprep.mubr.bf16.mxu0 %v1875_v11  ;;  %v2378_v45 = vld [vmem:[#allocation5 + $0x2c0] sm:$0xff]   ;;  %v2400_v11 = vld [vmem:[#allocation5 + $0x398] sm:$0xff]  }
  0x64   : > { %1542 = vmatprep.mubr.bf16.mxu1 %v1877_v15  ;;  %v2404_v15 = vld [vmem:[#allocation5 + $0x390] sm:$0xff]  }
  0x65   : > { %2078 = vmatpush3.bf16.msra.mxu0 %v2323_v46  ;;  %v2379_v46 = vld [vmem:[#allocation5 + $0x200] sm:$0xff]  }
  0x66   : > { %2100 = vmatpush3.bf16.msra.mxu1 %v2324_v47  ;;  %2079 = vmatprep.subr.bf16.mxu0 %v2325_v48  ;;  %v2380_v47 = vld [vmem:[#allocation5 + $0x280] sm:$0xff]  }
  0x67   : > { %2101 = vmatprep.subr.bf16.mxu1 %v2326_v49  ;;  %v264_v48 = vld [vmem:[%s2703_s27 + $0x20] sm:$0xff] }
  0x68   : > { %v272_v49 = vld [vmem:[%s2703_s27 + $0x60] sm:$0xff] }
  0x69   : > { %2080 = vmatpush3.bf16.msra.mxu0 %v2327_v50  ;;  %v265_v50 = vld [vmem:[%s2703_s27 + $0x28] sm:$0xff] }
  0x6a   : > { %2102 = vmatpush3.bf16.msra.mxu1 %v2328_v51  ;;  %2081 = vmatprep.subr.bf16.mxu0 %v2329_v52  ;;  %v273_v51 = vld [vmem:[%s2703_s27 + $0x68] sm:$0xff]  ;;  %v1878_v52 = vcombine.low %v264_v48, %v272_v49 }
  0x6b   : > { %2103 = vmatprep.subr.bf16.mxu1 %v2330_v53  ;;  %v1879_v53 = vcombine.high %v264_v48, %v272_v49 }
  0x6d   : > { %2082 = vmatpush3.bf16.msra.mxu0 %v2331_v54  ;;  %v1880_v54 = vcombine.low %v265_v50, %v273_v51 }
  0x6e   : > { %2104 = vmatpush3.bf16.msra.mxu1 %v2332_v55  ;;  %2083 = vmatprep.subr.bf16.mxu0 %v2333_v56  ;;  %v1881_v55 = vcombine.high %v265_v50, %v273_v51  ;;  %v2381_v56 = vld [vmem:[#allocation5 + $0x378] sm:$0xff]   ;;  %v1869_v50 = vld [vmem:[%s2789_s2] ss:$0 sm:$0xff] }
  0x6f   : > { %2105 = vmatprep.subr.bf16.mxu1 %v2334_v57  ;;  %v2382_v57 = vld [vmem:[#allocation5 + $0x3f8] sm:$0xff]  }
  0x71   : > { %2084 = vmatpush3.bf16.msra.mxu0 %v2335_v58  ;;  %v2383_v58 = vld [vmem:[#allocation5 + $0x338] sm:$0xff]  }
  0x72   : > { %2106 = vmatpush3.bf16.msra.mxu1 %v2336_v59  ;;  %2085 = vmatprep.subr.bf16.mxu0 %v2337_v60  ;;  %v2384_v59 = vld [vmem:[#allocation5 + $0x3b8] sm:$0xff]   ;;  %v2385_v60 = vld [vmem:[#allocation5 + $0x370] sm:$0xff]  }
  0x73   : > { %2107 = vmatprep.subr.bf16.mxu1 %v2338_v61  ;;  %v2386_v61 = vld [vmem:[#allocation5 + $0x3f0] sm:$0xff]  }
  0x75   : > { %2086 = vmatpush3.bf16.msra.mxu0 %v2339_v62  ;;  %v2387_v62 = vld [vmem:[#allocation5 + $0x330] sm:$0xff]  }
  0x76   : > { %2108 = vmatpush3.bf16.msra.mxu1 %v2340_v63  ;;  %2087 = vmatprep.subr.bf16.mxu0 %v2341_v0  ;;  %v2388_v63 = vld [vmem:[#allocation5 + $0x3b0] sm:$0xff]   ;;  %v2389_v0 = vld [vmem:[#allocation5 + $0x368] sm:$0xff]  }
  0x77   : > { %2109 = vmatprep.subr.bf16.mxu1 %v2342_v1  ;;  %v2390_v1 = vld [vmem:[#allocation5 + $0x3e8] sm:$0xff]  }
  0x79   : > { %2088 = vmatpush3.bf16.msra.mxu0 %v2343_v2  ;;  %v2391_v2 = vld [vmem:[#allocation5 + $0x328] sm:$0xff]  }
  0x7a   : > { %2110 = vmatpush3.bf16.msra.mxu1 %v2344_v3  ;;  %2089 = vmatprep.subr.bf16.mxu0 %v2345_v4  ;;  %v2392_v3 = vld [vmem:[#allocation5 + $0x3a8] sm:$0xff]   ;;  %v2393_v4 = vld [vmem:[#allocation5 + $0x360] sm:$0xff]  }
  0x7b   : > { %2111 = vmatprep.subr.bf16.mxu1 %v2346_v5  ;;  %v2394_v5 = vld [vmem:[#allocation5 + $0x3e0] sm:$0xff]  }
  0x7d   : > { %2090 = vmatpush3.bf16.msra.mxu0 %v2347_v6  ;;  %v2395_v6 = vld [vmem:[#allocation5 + $0x320] sm:$0xff]  }
  0x7e   : > { %2112 = vmatpush3.bf16.msra.mxu1 %v2348_v7  ;;  %2119 = vmatprep.subr.bf16.mxu0 %v2349_v16  ;;  %v2396_v7 = vld [vmem:[#allocation5 + $0x3a0] sm:$0xff]   ;;  %v2405_v16 = vld [vmem:[#allocation5 + $0x348] sm:$0xff]  }
  0x7f   : > { %2141 = vmatprep.subr.bf16.mxu1 %v2350_v17  ;;  %v2406_v17 = vld [vmem:[#allocation5 + $0x3c8] sm:$0xff]  }
  0x80   : > { %1502 = vmatmul.mubr.bf16.vlgmr.msra.gmra.mxu0 %v1874_v10  ;;  %v2399_v10 = vld [vmem:[#allocation5 + $0x318] sm:$0xff]  }
  0x81   : > { %1543 = vmatmul.mubr.bf16.vlgmr.msra.gmra.mxu1 %v1876_v14  ;;  %2120 = vmatpush3.bf16.msra.mxu0 %v2351_v18  ;;  %v2403_v14 = vld [vmem:[#allocation5 + $0x310] sm:$0xff]   ;;  %v2407_v18 = vld [vmem:[#allocation5 + $0x308] sm:$0xff]  }
  0x82   : > { %2142 = vmatpush3.bf16.msra.mxu1 %v2352_v19  ;;  %2121 = vmatprep.subr.bf16.mxu0 %v2353_v20  ;;  %v2408_v19 = vld [vmem:[#allocation5 + $0x388] sm:$0xff]   ;;  %v2409_v20 = vld [vmem:[#allocation5 + $0x340] sm:$0xff]  }
  0x83   : > { %2143 = vmatprep.subr.bf16.mxu1 %v2354_v21  ;;  %1583 = vmatprep.mubr.bf16.mxu0 %v1879_v53  ;;  %v2410_v21 = vld [vmem:[#allocation5 + $0x3c0] sm:$0xff]  }
  0x84   : > { %1624 = vmatprep.mubr.bf16.mxu1 %v1881_v55 }
  0x85   : > { %2122 = vmatpush3.bf16.msra.mxu0 %v2355_v22  ;;  %v2411_v22 = vld [vmem:[#allocation5 + $0x300] sm:$0xff]  }
  0x86   : > { %2144 = vmatpush3.bf16.msra.mxu1 %v2356_v23  ;;  %2123 = vmatprep.subr.bf16.mxu0 %v2357_v24  ;;  %v2412_v23 = vld [vmem:[#allocation5 + $0x380] sm:$0xff]   ;;  %v266_v24 = vld [vmem:[%s2703_s27 + $0x30] sm:$0xff] }
  0x87   : > { %2145 = vmatprep.subr.bf16.mxu1 %v2358_v25  ;;  %v274_v25 = vld [vmem:[%s2703_s27 + $0x70] sm:$0xff] }
  0x89   : > { %2124 = vmatpush3.bf16.msra.mxu0 %v2359_v26  ;;  %v267_v26 = vld [vmem:[%s2703_s27 + $0x38] sm:$0xff] }
  0x8a   : > { %2146 = vmatpush3.bf16.msra.mxu1 %v2360_v27  ;;  %2125 = vmatprep.subr.bf16.mxu0 %v2361_v28  ;;  %v1882_v27 = vcombine.low %v266_v24, %v274_v25  ;;  %v1883_v28 = vcombine.high %v266_v24, %v274_v25 }
  0x8b   : > { %2147 = vmatprep.subr.bf16.mxu1 %v2362_v29  ;;  %v275_v29 = vld [vmem:[%s2703_s27 + $0x78] sm:$0xff] }
  0x8d   : > { %2126 = vmatpush3.bf16.msra.mxu0 %v2363_v30  ;;  %v1884_v30 = vcombine.low %v267_v26, %v275_v29 }
  0x8e   : > { %2148 = vmatpush3.bf16.msra.mxu1 %v2364_v31  ;;  %2127 = vmatprep.subr.bf16.mxu0 %v2365_v32  ;;  %v1885_v31 = vcombine.high %v267_v26, %v275_v29 }
  0x8f   : > { %2149 = vmatprep.subr.bf16.mxu1 %v2366_v33 }
  0x91   : > { %2128 = vmatpush3.bf16.msra.mxu0 %v2367_v34 }
  0x92   : > { %2150 = vmatpush3.bf16.msra.mxu1 %v2368_v35  ;;  %2129 = vmatprep.subr.bf16.mxu0 %v2369_v36 }
  0x93   : > { %2151 = vmatprep.subr.bf16.mxu1 %v2370_v37 }
  0x95   : > { %2130 = vmatpush3.bf16.msra.mxu0 %v2371_v38 }
  0x96   : > { %2152 = vmatpush3.bf16.msra.mxu1 %v2372_v39  ;;  %2131 = vmatprep.subr.bf16.mxu0 %v2373_v40 }
  0x97   : > { %2153 = vmatprep.subr.bf16.mxu1 %v2374_v41 }
  0x99   : > { %2132 = vmatpush3.bf16.msra.mxu0 %v2375_v42 }
  0x9a   : > { %2154 = vmatpush3.bf16.msra.mxu1 %v2376_v43  ;;  %2133 = vmatprep.subr.bf16.mxu0 %v2377_v44 }
  0x9b   : > { %2155 = vmatprep.subr.bf16.mxu1 %v2378_v45 }
  0x9d   : > { %2134 = vmatpush3.bf16.msra.mxu0 %v2379_v46 }
  0x9e   : > { %2156 = vmatpush3.bf16.msra.mxu1 %v2380_v47  ;;  %2163 = vmatprep.subr.bf16.mxu0 %v2381_v56 }
  0x9f   : > { %2185 = vmatprep.subr.bf16.mxu1 %v2382_v57 }
  0xa0   : > { %1584 = vmatmul.mubr.bf16.vlgmr.msra.gmra.mxu0 %v1878_v52 }
  0xa1   : > { %1625 = vmatmul.mubr.bf16.vlgmr.msra.gmra.mxu1 %v1880_v54  ;;  %2164 = vmatpush3.bf16.msra.mxu0 %v2383_v58 }
  0xa2   : > { %2186 = vmatpush3.bf16.msra.mxu1 %v2384_v59  ;;  %2165 = vmatprep.subr.bf16.mxu0 %v2385_v60 }
  0xa3   : > { %2187 = vmatprep.subr.bf16.mxu1 %v2386_v61  ;;  %1665 = vmatprep.mubr.bf16.mxu0 %v1883_v28 }
  0xa4   : > { %1706 = vmatprep.mubr.bf16.mxu1 %v1885_v31 }
  0xa5   : > { %2166 = vmatpush3.bf16.msra.mxu0 %v2387_v62 }
  0xa6   : > { %2188 = vmatpush3.bf16.msra.mxu1 %v2388_v63  ;;  %2167 = vmatprep.subr.bf16.mxu0 %v2389_v0 }
  0xa7   : > { %2189 = vmatprep.subr.bf16.mxu1 %v2390_v1 }
  0xa9   : > { %2168 = vmatpush3.bf16.msra.mxu0 %v2391_v2 }
  0xaa   : > { %2190 = vmatpush3.bf16.msra.mxu1 %v2392_v3  ;;  %2169 = vmatprep.subr.bf16.mxu0 %v2393_v4 }
  0xab   : > { %2191 = vmatprep.subr.bf16.mxu1 %v2394_v5 }
  0xad   : > { %2170 = vmatpush3.bf16.msra.mxu0 %v2395_v6 }
  0xae   : > { %2192 = vmatpush3.bf16.msra.mxu1 %v2396_v7  ;;  %2171 = vmatprep.subr.bf16.mxu0 %v2397_v8 }
  0xaf   : > { %2193 = vmatprep.subr.bf16.mxu1 %v2398_v9 }
  0xb1   : > { %2172 = vmatpush3.bf16.msra.mxu0 %v2399_v10 }
  0xb2   : > { %2194 = vmatpush3.bf16.msra.mxu1 %v2400_v11  ;;  %2173 = vmatprep.subr.bf16.mxu0 %v2401_v12 }
  0xb3   : > { %2195 = vmatprep.subr.bf16.mxu1 %v2402_v13 }
  0xb5   : > { %2174 = vmatpush3.bf16.msra.mxu0 %v2403_v14 }
  0xb6   : > { %2196 = vmatpush3.bf16.msra.mxu1 %v2404_v15  ;;  %2175 = vmatprep.subr.bf16.mxu0 %v2405_v16 }
  0xb7   : > { %2197 = vmatprep.subr.bf16.mxu1 %v2406_v17 }
  0xb9   : > { %2176 = vmatpush3.bf16.msra.mxu0 %v2407_v18 }
  0xba   : > { %2198 = vmatpush3.bf16.msra.mxu1 %v2408_v19  ;;  %2177 = vmatprep.subr.bf16.mxu0 %v2409_v20 }
  0xbb   : > { %2199 = vmatprep.subr.bf16.mxu1 %v2410_v21 }
  0xbd   : > { %2178 = vmatpush3.bf16.msra.mxu0 %v2411_v22 }
  0xbe   : > { %2200 = vmatpush3.bf16.msra.mxu1 %v2412_v23 }
  0xc0   : > { %1666 = vmatmul.mubr.bf16.vlgmr.msra.gmra.mxu0 %v1882_v27 }
  0xc1   : > { %1707 = vmatmul.mubr.bf16.vlgmr.msra.gmra.mxu1 %v1884_v30 }
 0x120   : > { %v2047_v32 = vpop.f32.mrf.mxu0 }
 0x121   : > { %v2069_v33 = vpop.f32.mrf.mxu1 }
 0x122   : > { %v2048_v34 = vpop.f32.mrf.mxu0 }
 0x123   : > { %v2070_v35 = vpop.f32.mrf.mxu1  ;;  %v2049_v48 = vadd.f32 %v2048_v34, %v2047_v32 }
 0x124   : > { %v2050_v36 = vpop.f32.mrf.mxu0  ;;  %v2071_v55 = vadd.f32 %v2070_v35, %v2069_v33 }
 0x125   : > { %v2072_v37 = vpop.f32.mrf.mxu1  ;;  %v1422_v54 = vadd.f32 %v2049_v48, %v1869_v50 }
 0x126   : > { %v2051_v38 = vpop.f32.mrf.mxu0 }
 0x127   : > { %v2073_v40 = vpop.f32.mrf.mxu1  ;;  %v2052_v51 = vadd.f32 %v2051_v38, %v2050_v36  ;;  %v1463_v60 = vadd.f32 %v2071_v55, %v1422_v54 }
 0x128   : > { %v2074_v61 = vadd.f32 %v2073_v40, %v2072_v37 }
 0x129   : > { %v1425_v56 = vadd.f32 %v2052_v51, %v1869_v50 }
 0x12b   : > { %v1466_v63 = vadd.f32 %v2074_v61, %v1425_v56 }
 0x140   : > { %v2091_v39 = vpop.f32.mrf.mxu0 }
 0x141   : > { %v2113_v41 = vpop.f32.mrf.mxu1 }
 0x142   : > { %v2092_v42 = vpop.f32.mrf.mxu0 }
 0x143   : > { %v2114_v43 = vpop.f32.mrf.mxu1  ;;  %v2093_v57 = vadd.f32 %v2092_v42, %v2091_v39 }
 0x144   : > { %v2094_v44 = vpop.f32.mrf.mxu0  ;;  %v2115_v1 = vadd.f32 %v2114_v43, %v2113_v41 }
 0x145   : > { %v2116_v45 = vpop.f32.mrf.mxu1  ;;  %v1504_v0 = vadd.f32 %v2093_v57, %v1463_v60 }
 0x146   : > { %v2095_v46 = vpop.f32.mrf.mxu0 }
 0x147   : > { %v2117_v49 = vpop.f32.mrf.mxu1  ;;  %v2096_v62 = vadd.f32 %v2095_v46, %v2094_v44  ;;  %v1545_v6 = vadd.f32 %v2115_v1, %v1504_v0 }
 0x148   : > { %v2118_v7 = vadd.f32 %v2117_v49, %v2116_v45 }
 0x149   : > { %v1507_v4 = vadd.f32 %v2096_v62, %v1466_v63 }
 0x14b   : > { %v1548_v11 = vadd.f32 %v2118_v7, %v1507_v4 }
 0x160   : > { %v2135_v47 = vpop.f32.mrf.mxu0 }
 0x161   : > { %v2157_v52 = vpop.f32.mrf.mxu1 }
 0x162   : > { %v2136_v53 = vpop.f32.mrf.mxu0 }
 0x163   : > { %v2158_v58 = vpop.f32.mrf.mxu1  ;;  %v2137_v5 = vadd.f32 %v2136_v53, %v2135_v47 }
 0x164   : > { %v2138_v59 = vpop.f32.mrf.mxu0  ;;  %v2159_v13 = vadd.f32 %v2158_v58, %v2157_v52 }
 0x165   : > { %v2160_v2 = vpop.f32.mrf.mxu1  ;;  %v1586_v12 = vadd.f32 %v2137_v5, %v1545_v6 }
 0x166   : > { %v2139_v3 = vpop.f32.mrf.mxu0 }
 0x167   : > { %v2140_v8 = vadd.f32 %v2139_v3, %v2138_v59  ;;  %v2161_v9 = vpop.f32.mrf.mxu1  ;;  %v1627_v20 = vadd.f32 %v2159_v13, %v1586_v12 }
 0x168   : > { %v2162_v21 = vadd.f32 %v2161_v9, %v2160_v2 }
 0x169   : > { %v1589_v16 = vadd.f32 %v2140_v8, %v1548_v11 }
 0x16b   : > { %v1630_v24 = vadd.f32 %v2162_v21, %v1589_v16 }
 0x180   : > { %v2179_v10 = vpop.f32.mrf.mxu0 }
 0x181   : > { %v2201_v14 = vpop.f32.mrf.mxu1 }
 0x182   : > { %v2180_v15 = vpop.f32.mrf.mxu0 }
 0x183   : > { %v2181_v17 = vadd.f32 %v2180_v15, %v2179_v10  ;;  %v2202_v18 = vpop.f32.mrf.mxu1 }
 0x184   : > { %v2182_v19 = vpop.f32.mrf.mxu0  ;;  %v2203_v28 = vadd.f32 %v2202_v18, %v2201_v14 }
 0x185   : > { %v2204_v22 = vpop.f32.mrf.mxu1  ;;  %v1668_v25 = vadd.f32 %v2181_v17, %v1627_v20 }
 0x186   : > { %v2183_v23 = vpop.f32.mrf.mxu0 }
 0x187   : > { %v2184_v26 = vadd.f32 %v2183_v23, %v2182_v19  ;;  %v2205_v27 = vpop.f32.mrf.mxu1  ;;  %v1709_v31 = vadd.f32 %v2203_v28, %v1668_v25 }
 0x188   : > { %v2206_v30 = vadd.f32 %v2205_v27, %v2204_v22 }
 0x189   : > { %v1671_v29 = vadd.f32 %v2184_v26, %v1630_v24 }
 0x18b   : > { %v1712_v32 = vadd.f32 %v2206_v30, %v1671_v29 }
 0x18d   : > { %v2029_v33 = vpack.c.bf16 %v1712_v32, %v1709_v31 }
 0x18f   : > { %2030 = vst [vmem:[%s251_s4] sm:$0xff] %v2029_v33  }
 0x190   : > { %2480 = shalt.err (!%p2477_p5)
}
 0x191   : > { %s2481_s26 = scalar_lea.hbm %s2737_s10, 128  ;;  %s2485_s20 = scalar_lea.hbm %s2790_s3, 256 }
 0x192   : > { %p2482_p7 = scmp.ne.s32.totalorder %s2737_s10, %s2481_s26  ;;  %p2486_p9 = scmp.lt.s32.totalorder %s2737_s10, %s2790_s3 }
 0x193   : > { %p2487_p11 = scmp.lt.s32.totalorder %s2485_s20, %s2481_s26 }
 0x194   : > { %p2483_p4 = pnand %p2482_p7, %p2670_p13 }
 0x195   : > { %p2488_p12 = por %p2487_p11, %p2486_p9 }
 0x196   : > { %p2484_p6 = pneg %p2483_p4 }
 0x198   : > { %p2489_p1 = pnand %p2488_p12, %p2484_p6 }
 0x19a   : > { %2492 = shalt.err (!%p2489_p1)
}
 0x19b   : > { %s2559_s29 = smov 64   ;;  %s2560_s4 = smov 4  }
 0x19c   : > { %2213 = dma.vmem_to_hbm [thread:$0]  (%p2670_p13), %s2739_s5, 128, %s2737_s10, %s1726_s7, %s2559_s29, %s2559_s29, %s2560_s4  }
 0x19d PF: > { %s1755_s21 = sand.u32 1, %s2531_s12   ;;  %p2804_p8 = scmp.ne.s32.totalorder %s2796_s23, 0 }
 0x19e   : > { %p2805_p10 = scmp.ge.s32.totalorder %s2551_s17, 2  ;;  %s1756_s6 = scalar_lea.sflag [#allocation4], %s1755_s21 }
 0x1a0   : > { %p2224_p0 = pnand %p2805_p10, %p2804_p8 }
 0x1a2   : > { %p2225_p2 = pneg %p2224_p0 }
 0x1a4   : > { %2526 = dma.done.wait (%p2225_p2), %s1756_s6, 128  }
 0x1a5   : > { %2528 = vsyncadd (%p2225_p2), %s1756_s6, 4294967168  ;;  %s20_s17 = sadd.s32 1, %s2551_s17   ;;  %s2806_s12 = smov %s2535_s13 }
 0x1a6   : > { %p17_p3 = scmp.ge.s32.totalorder %s20_s17, 4   ;;  %s2807_s13 = smov %s2539_s14 }
 0x1a7   : > { %s2808_s14 = smov %s2679_s19  ;;  %s2809_s15 = smov %s2547_s16 }
 0x1a8   : > { %s2810_s16 = smov %s2812_s28  ;;  %19 = sbr.rel (!%p17_p3) target bundleno = 7 (0x7), region = 85 }
 0x1ad   :  { %1761 = vsyncpa [#allocation3], 1 }
 0x1ae   :  { %1763 = vsyncpa [#allocation3 + $0x1], 1 }
 0x1af   :  { %1764 = vsyncpa [#allocation6], 1 }
 0x1b0   :  { %1765 = vsyncpa [#allocation4], 1 }
 0x1b1   :  { %1767 = vsyncpa [#allocation4 + $0x1], 1 }

</bundles_post_ra>
